<compile_context>
chip_gen: v7x
topology: tpu7x:2x2x1
jax: 0.10.0
libtpu: 0.0.40
codegen_flags: <defaults>
</compile_context>

<pallas_src>
import jax
import jax.numpy as jnp
from jax.experimental import pallas as pl
from jax.experimental.pallas import tpu as pltpu

LANE = 128  # TPU lane width; hidden/output feature dims are padded to this.


def _round_up(n, m):
    return ((n + m - 1) // m) * m


def _bf16_epilogue_supported():
    """bf16 bias-add / ReLU only pays off where the VPU has a bf16 path (v6e/v7x)."""
    try:
        kind = jax.devices()[0].device_kind.lower()
    except Exception:
        return False
    return ("v6" in kind) or ("v7" in kind)


def _make_mlp_kernel(bf16_epilogue):
    """Build the fused 5-layer MLP kernel for one batch tile (all weights VMEM-resident).

    Matmuls: bf16 x bf16 -> f32 accumulation on the MXU.
    Hidden epilogues (bias + ReLU): bf16 on v6e/v7x, f32 on v5e.
    Final layer bias-add / output: f32.
    """

    def _hidden(h, w_ref, b_ref):
        acc = jnp.dot(h, w_ref[...], preferred_element_type=jnp.float32)
        if bf16_epilogue:
            # b_ref is bf16; cast the f32 accumulator once, then VPU work is bf16.
            return jnp.maximum(acc.astype(jnp.bfloat16) + b_ref[...], 0.0)
        # b_ref is f32; epilogue in f32, single cast back to bf16 for the next dot.
        return jnp.maximum(acc + b_ref[...], 0.0).astype(jnp.bfloat16)

    def kernel(x_ref,
               w1_ref, b1_ref,
               w2_ref, b2_ref,
               w3_ref, b3_ref,
               w4_ref, b4_ref,
               w5_ref, b5_ref,
               o_ref):
        h = x_ref[...]                      # (TB, num_in) bf16 — already cast on host
        h = _hidden(h, w1_ref, b1_ref)
        h = _hidden(h, w2_ref, b2_ref)
        h = _hidden(h, w3_ref, b3_ref)
        h = _hidden(h, w4_ref, b4_ref)
        out = jnp.dot(h, w5_ref[...], preferred_element_type=jnp.float32) + b5_ref[...]
        o_ref[...] = out.astype(o_ref.dtype)

    return kernel


def init_params(key, num_in, num_out, num_hid):
    """Deterministic init mirroring the PyTorch module: N(mean=0.01, std=1.5).

    Returns unpadded f32 params: list of (W (in, out), b (1, out)) for 5 layers.
    """
    dims = [(num_in, num_hid), (num_hid, num_hid), (num_hid, num_hid),
            (num_hid, num_hid), (num_hid, num_out)]
    params = []
    for (d_in, d_out) in dims:
        key, kw, kb = jax.random.split(key, 3)
        w = 0.01 + 1.5 * jax.random.normal(kw, (d_in, d_out), dtype=jnp.float32)
        b = 0.01 + 1.5 * jax.random.normal(kb, (1, d_out), dtype=jnp.float32)
        params.append((w, b))
    return params


def prepare_padded_params(params, bf16_epilogue):
    """Zero-pad output feature dims (and hidden input dims) to multiples of 128.

    Layer 0 keeps its input dim unpadded so x needs no feature padding.
    Weights -> bf16.  Hidden biases -> bf16 if bf16_epilogue else f32.  Final bias f32.
    """
    n = len(params)
    padded = []
    for i, (w, b) in enumerate(params):
        d_in, d_out = w.shape
        p_in = d_in if i == 0 else _round_up(d_in, LANE)
        p_out = _round_up(d_out, LANE)
        w_p = jnp.zeros((p_in, p_out), jnp.float32).at[:d_in, :d_out].set(w)
        b_p = jnp.zeros((1, p_out), jnp.float32).at[:, :d_out].set(b)
        b_dtype = jnp.bfloat16 if (bf16_epilogue and i < n - 1) else jnp.float32
        padded.append((w_p.astype(jnp.bfloat16), b_p.astype(b_dtype)))
    return padded


def _choose_block_b(B):
    """Batch tile: blocks up to 512 rows, but keep >= 2 grid steps (v7x 2-TC sharding)."""
    if B <= LANE:
        return _round_up(max(B, 1), 16)          # multiple of 16 for bf16 sublane packing
    return min(512, _round_up(pl.cdiv(B, 2), LANE))


def final_pred_nn_forward(x, padded_params, num_out, block_b=None):
    """x: (B, num_in) f32. padded_params: output of prepare_padded_params."""
    B, num_in = x.shape
    p_out = padded_params[-1][0].shape[1]
    bf16_epilogue = padded_params[0][1].dtype == jnp.bfloat16

    if block_b is None:
        block_b = _choose_block_b(B)
    grid = (pl.cdiv(B, block_b),)                # ragged last block is fine: rows independent

    # Only transform on x: a cheap f32 -> bf16 cast (no batch/feature re-pad).
    x_bf = x.astype(jnp.bfloat16)

    _pinned = lambda i: (0, 0)                   # weights/biases stay VMEM-resident

    in_specs = [pl.BlockSpec((block_b, num_in), lambda i: (i, 0))]
    flat_args = [x_bf]
    for (w, b) in padded_params:
        in_specs.append(pl.BlockSpec(w.shape, _pinned))
        in_specs.append(pl.BlockSpec(b.shape, _pinned))
        flat_args.append(w)
        flat_args.append(b)
    out_spec = pl.BlockSpec((block_b, p_out), lambda i: (i, 0))

    flops = sum(2 * B * w.shape[0] * w.shape[1] for (w, _) in padded_params)
    bytes_accessed = (
        x_bf.size * x_bf.dtype.itemsize
        + sum(w.size * w.dtype.itemsize + b.size * b.dtype.itemsize
              for (w, b) in padded_params)
        + B * p_out * 4)
    cost = pl.CostEstimate(flops=flops, transcendentals=0, bytes_accessed=bytes_accessed)

    out_p = pl.pallas_call(
        _make_mlp_kernel(bf16_epilogue),
        out_shape=jax.ShapeDtypeStruct((B, p_out), jnp.float32),
        grid=grid,
        in_specs=in_specs,
        out_specs=out_spec,
        compiler_params=pltpu.CompilerParams(
            dimension_semantics=("parallel",),   # lets v7x shard the batch over both TCs
        ),
        cost_estimate=cost,
    )(*flat_args)

    # Strip feature padding only (no batch padding was added).
    return out_p[:, :num_out]


def reference_forward(x, params, bf16_epilogue):
    """Pure-JAX reference mirroring the kernel's numerics exactly."""
    h = x.astype(jnp.bfloat16)
    n = len(params)
    for i, (w, b) in enumerate(params):
        acc = jnp.dot(h, w.astype(jnp.bfloat16), preferred_element_type=jnp.float32)
        if i < n - 1:
            if bf16_epilogue:
                h = jnp.maximum(acc.astype(jnp.bfloat16) + b.astype(jnp.bfloat16), 0.0)
            else:
                h = jnp.maximum(acc + b, 0.0).astype(jnp.bfloat16)
        else:
            return acc + b


if __name__ == "__main__":
    # Shapes consistent with the module's forward: x is (batch, num_in).
    batch, num_in, num_hid, num_out = 256, 32, 64, 16

    key = jax.random.PRNGKey(0)
    key, kx = jax.random.split(key)
    x = jax.random.normal(kx, (batch, num_in), dtype=jnp.float32)

    params = init_params(key, num_in, num_out, num_hid)
    bf16_ep = _bf16_epilogue_supported()
    padded_params = prepare_padded_params(params, bf16_ep)

    out = final_pred_nn_forward(x, padded_params, num_out)
    out = jax.block_until_ready(out)

    ref = reference_forward(x, params, bf16_ep)
    assert out.shape == (batch, num_out)
    rel_err = float(jnp.max(jnp.abs(out - ref)) / (jnp.max(jnp.abs(ref)) + 1e-6))
    assert rel_err < 2e-2, f"mismatch vs reference, rel_err={rel_err}"

    print("KERNEL_OK")
</pallas_src>

<mosaic_0001>
module attributes {stable_mosaic.version = 11 : i64} {
  func.func @kernel(%arg0: i32, %arg1: memref<128x32xbf16, #tpu.memory_space<vmem>>, %arg2: memref<32x128xbf16, #tpu.memory_space<vmem>>, %arg3: memref<1x128xf32, #tpu.memory_space<vmem>>, %arg4: memref<128x128xbf16, #tpu.memory_space<vmem>>, %arg5: memref<1x128xf32, #tpu.memory_space<vmem>>, %arg6: memref<128x128xbf16, #tpu.memory_space<vmem>>, %arg7: memref<1x128xf32, #tpu.memory_space<vmem>>, %arg8: memref<128x128xbf16, #tpu.memory_space<vmem>>, %arg9: memref<1x128xf32, #tpu.memory_space<vmem>>, %arg10: memref<128x128xbf16, #tpu.memory_space<vmem>>, %arg11: memref<1x128xf32, #tpu.memory_space<vmem>>, %arg12: memref<128x128xf32, #tpu.memory_space<vmem>>) attributes {dimension_semantics = [#tpu.dimension_semantics<parallel>], iteration_bounds = array<i64: 2>, scalar_prefetch = 0 : i64, scratch_operands = 0 : i64, tpu.core_type = #tpu.core_type<tc>, window_params = [{transform_indices = @transform_0, window_bounds = array<i64: 128, 32>}, {pipeline_mode = #tpu.pipeline_mode<synchronous>, transform_indices = @transform_1, window_bounds = array<i64: 32, 128>}, {pipeline_mode = #tpu.pipeline_mode<synchronous>, transform_indices = @transform_2, window_bounds = array<i64: 1, 128>}, {pipeline_mode = #tpu.pipeline_mode<synchronous>, transform_indices = @transform_3, window_bounds = array<i64: 128, 128>}, {pipeline_mode = #tpu.pipeline_mode<synchronous>, transform_indices = @transform_4, window_bounds = array<i64: 1, 128>}, {pipeline_mode = #tpu.pipeline_mode<synchronous>, transform_indices = @transform_5, window_bounds = array<i64: 128, 128>}, {pipeline_mode = #tpu.pipeline_mode<synchronous>, transform_indices = @transform_6, window_bounds = array<i64: 1, 128>}, {pipeline_mode = #tpu.pipeline_mode<synchronous>, transform_indices = @transform_7, window_bounds = array<i64: 128, 128>}, {pipeline_mode = #tpu.pipeline_mode<synchronous>, transform_indices = @transform_8, window_bounds = array<i64: 1, 128>}, {pipeline_mode = #tpu.pipeline_mode<synchronous>, transform_indices = @transform_9, window_bounds = array<i64: 128, 128>}, {pipeline_mode = #tpu.pipeline_mode<synchronous>, transform_indices = @transform_10, window_bounds = array<i64: 1, 128>}, {transform_indices = @transform_11, window_bounds = array<i64: 128, 128>}]} {
    %c0 = arith.constant 0 : index
    %c0_0 = arith.constant 0 : index
    %0 = vector.load %arg1[%c0, %c0_0] : memref<128x32xbf16, #tpu.memory_space<vmem>>, vector<128x32xbf16>
    %c0_1 = arith.constant 0 : index
    %c0_2 = arith.constant 0 : index
    %1 = vector.load %arg2[%c0_1, %c0_2] : memref<32x128xbf16, #tpu.memory_space<vmem>>, vector<32x128xbf16>
    %cst = arith.constant dense<0.000000e+00> : vector<128x128xf32>
    %2 = tpu.matmul %0, %1, %cst {dimension_numbers = #tpu.dot_dimension_numbers<[1], [0], [0], [1], [0, 0, 1, 1], [], []>} : vector<128x32xbf16>, vector<32x128xbf16>, vector<128x128xf32> -> vector<128x128xf32>
    %c0_3 = arith.constant 0 : index
    %c0_4 = arith.constant 0 : index
    %3 = vector.load %arg3[%c0_3, %c0_4] : memref<1x128xf32, #tpu.memory_space<vmem>>, vector<1x128xf32>
    %4 = vector.broadcast %3 : vector<1x128xf32> to vector<128x128xf32>
    %5 = arith.addf %2, %4 : vector<128x128xf32>
    %cst_5 = arith.constant 0.000000e+00 : f32
    %6 = vector.broadcast %cst_5 : f32 to vector<128x128xf32>
    %7 = arith.maximumf %5, %6 : vector<128x128xf32>
    %8 = arith.truncf %7 : vector<128x128xf32> to vector<128x128xbf16>
    %c0_6 = arith.constant 0 : index
    %c0_7 = arith.constant 0 : index
    %9 = vector.load %arg4[%c0_6, %c0_7] : memref<128x128xbf16, #tpu.memory_space<vmem>>, vector<128x128xbf16>
    %cst_8 = arith.constant dense<0.000000e+00> : vector<128x128xf32>
    %10 = tpu.matmul %8, %9, %cst_8 {dimension_numbers = #tpu.dot_dimension_numbers<[1], [0], [0], [1], [0, 0, 1, 1], [], []>} : vector<128x128xbf16>, vector<128x128xbf16>, vector<128x128xf32> -> vector<128x128xf32>
    %c0_9 = arith.constant 0 : index
    %c0_10 = arith.constant 0 : index
    %11 = vector.load %arg5[%c0_9, %c0_10] : memref<1x128xf32, #tpu.memory_space<vmem>>, vector<1x128xf32>
    %12 = vector.broadcast %11 : vector<1x128xf32> to vector<128x128xf32>
    %13 = arith.addf %10, %12 : vector<128x128xf32>
    %cst_11 = arith.constant 0.000000e+00 : f32
    %14 = vector.broadcast %cst_11 : f32 to vector<128x128xf32>
    %15 = arith.maximumf %13, %14 : vector<128x128xf32>
    %16 = arith.truncf %15 : vector<128x128xf32> to vector<128x128xbf16>
    %c0_12 = arith.constant 0 : index
    %c0_13 = arith.constant 0 : index
    %17 = vector.load %arg6[%c0_12, %c0_13] : memref<128x128xbf16, #tpu.memory_space<vmem>>, vector<128x128xbf16>
    %cst_14 = arith.constant dense<0.000000e+00> : vector<128x128xf32>
    %18 = tpu.matmul %16, %17, %cst_14 {dimension_numbers = #tpu.dot_dimension_numbers<[1], [0], [0], [1], [0, 0, 1, 1], [], []>} : vector<128x128xbf16>, vector<128x128xbf16>, vector<128x128xf32> -> vector<128x128xf32>
    %c0_15 = arith.constant 0 : index
    %c0_16 = arith.constant 0 : index
    %19 = vector.load %arg7[%c0_15, %c0_16] : memref<1x128xf32, #tpu.memory_space<vmem>>, vector<1x128xf32>
    %20 = vector.broadcast %19 : vector<1x128xf32> to vector<128x128xf32>
    %21 = arith.addf %18, %20 : vector<128x128xf32>
    %cst_17 = arith.constant 0.000000e+00 : f32
    %22 = vector.broadcast %cst_17 : f32 to vector<128x128xf32>
    %23 = arith.maximumf %21, %22 : vector<128x128xf32>
    %24 = arith.truncf %23 : vector<128x128xf32> to vector<128x128xbf16>
    %c0_18 = arith.constant 0 : index
    %c0_19 = arith.constant 0 : index
    %25 = vector.load %arg8[%c0_18, %c0_19] : memref<128x128xbf16, #tpu.memory_space<vmem>>, vector<128x128xbf16>
    %cst_20 = arith.constant dense<0.000000e+00> : vector<128x128xf32>
    %26 = tpu.matmul %24, %25, %cst_20 {dimension_numbers = #tpu.dot_dimension_numbers<[1], [0], [0], [1], [0, 0, 1, 1], [], []>} : vector<128x128xbf16>, vector<128x128xbf16>, vector<128x128xf32> -> vector<128x128xf32>
    %c0_21 = arith.constant 0 : index
    %c0_22 = arith.constant 0 : index
    %27 = vector.load %arg9[%c0_21, %c0_22] : memref<1x128xf32, #tpu.memory_space<vmem>>, vector<1x128xf32>
    %28 = vector.broadcast %27 : vector<1x128xf32> to vector<128x128xf32>
    %29 = arith.addf %26, %28 : vector<128x128xf32>
    %cst_23 = arith.constant 0.000000e+00 : f32
    %30 = vector.broadcast %cst_23 : f32 to vector<128x128xf32>
    %31 = arith.maximumf %29, %30 : vector<128x128xf32>
    %32 = arith.truncf %31 : vector<128x128xf32> to vector<128x128xbf16>
    %c0_24 = arith.constant 0 : index
    %c0_25 = arith.constant 0 : index
    %33 = vector.load %arg10[%c0_24, %c0_25] : memref<128x128xbf16, #tpu.memory_space<vmem>>, vector<128x128xbf16>
    %cst_26 = arith.constant dense<0.000000e+00> : vector<128x128xf32>
    %34 = tpu.matmul %32, %33, %cst_26 {dimension_numbers = #tpu.dot_dimension_numbers<[1], [0], [0], [1], [0, 0, 1, 1], [], []>} : vector<128x128xbf16>, vector<128x128xbf16>, vector<128x128xf32> -> vector<128x128xf32>
    %c0_27 = arith.constant 0 : index
    %c0_28 = arith.constant 0 : index
    %35 = vector.load %arg11[%c0_27, %c0_28] : memref<1x128xf32, #tpu.memory_space<vmem>>, vector<1x128xf32>
    %36 = vector.broadcast %35 : vector<1x128xf32> to vector<128x128xf32>
    %37 = arith.addf %34, %36 : vector<128x128xf32>
    %c0_29 = arith.constant 0 : index
    %c0_30 = arith.constant 0 : index
    %38 = vector.load %arg12[%c0_29, %c0_30] : memref<128x128xf32, #tpu.memory_space<vmem>>, vector<128x128xf32>
    tpu.vector_store %arg12[%c0_29, %c0_30], %37 {strides = array<i32>} : memref<128x128xf32, #tpu.memory_space<vmem>>, vector<128x128xf32>,
    return
  }
  func.func @transform_0(%arg0: i32) -> (i32, i32) {
    %c0_i32 = arith.constant 0 : i32
    %c0_i32_0 = arith.constant 0 : i32
    return %arg0, %c0_i32 : i32, i32
  }
  func.func @transform_1(%arg0: i32) -> (i32, i32) {
    %c0_i32 = arith.constant 0 : i32
    %c0_i32_0 = arith.constant 0 : i32
    %c0_i32_1 = arith.constant 0 : i32
    return %c0_i32, %c0_i32_0 : i32, i32
  }
  func.func @transform_2(%arg0: i32) -> (i32, i32) {
    %c0_i32 = arith.constant 0 : i32
    %c0_i32_0 = arith.constant 0 : i32
    %c0_i32_1 = arith.constant 0 : i32
    return %c0_i32, %c0_i32_0 : i32, i32
  }
  func.func @transform_3(%arg0: i32) -> (i32, i32) {
    %c0_i32 = arith.constant 0 : i32
    %c0_i32_0 = arith.constant 0 : i32
    %c0_i32_1 = arith.constant 0 : i32
    return %c0_i32, %c0_i32_0 : i32, i32
  }
  func.func @transform_4(%arg0: i32) -> (i32, i32) {
    %c0_i32 = arith.constant 0 : i32
    %c0_i32_0 = arith.constant 0 : i32
    %c0_i32_1 = arith.constant 0 : i32
    return %c0_i32, %c0_i32_0 : i32, i32
  }
  func.func @transform_5(%arg0: i32) -> (i32, i32) {
    %c0_i32 = arith.constant 0 : i32
    %c0_i32_0 = arith.constant 0 : i32
    %c0_i32_1 = arith.constant 0 : i32
    return %c0_i32, %c0_i32_0 : i32, i32
  }
  func.func @transform_6(%arg0: i32) -> (i32, i32) {
    %c0_i32 = arith.constant 0 : i32
    %c0_i32_0 = arith.constant 0 : i32
    %c0_i32_1 = arith.constant 0 : i32
    return %c0_i32, %c0_i32_0 : i32, i32
  }
  func.func @transform_7(%arg0: i32) -> (i32, i32) {
    %c0_i32 = arith.constant 0 : i32
    %c0_i32_0 = arith.constant 0 : i32
    %c0_i32_1 = arith.constant 0 : i32
    return %c0_i32, %c0_i32_0 : i32, i32
  }
  func.func @transform_8(%arg0: i32) -> (i32, i32) {
    %c0_i32 = arith.constant 0 : i32
    %c0_i32_0 = arith.constant 0 : i32
    %c0_i32_1 = arith.constant 0 : i32
    return %c0_i32, %c0_i32_0 : i32, i32
  }
  func.func @transform_9(%arg0: i32) -> (i32, i32) {
    %c0_i32 = arith.constant 0 : i32
    %c0_i32_0 = arith.constant 0 : i32
    %c0_i32_1 = arith.constant 0 : i32
    return %c0_i32, %c0_i32_0 : i32, i32
  }
  func.func @transform_10(%arg0: i32) -> (i32, i32) {
    %c0_i32 = arith.constant 0 : i32
    %c0_i32_0 = arith.constant 0 : i32
    %c0_i32_1 = arith.constant 0 : i32
    return %c0_i32, %c0_i32_0 : i32, i32
  }
  func.func @transform_11(%arg0: i32) -> (i32, i32) {
    %c0_i32 = arith.constant 0 : i32
    %c0_i32_0 = arith.constant 0 : i32
    return %arg0, %c0_i32 : i32, i32
  }
}

</mosaic_0001>

<bundles_post_ra>
// kernel: tpu_custom_call.1
= control target key start
LH: loop header
LB: loop body
LE: loop exit
PB: predicated region body
PF: predicated region fallthrough
CT: control target
= control target key end

     0   :  { %s2566_s0 = inlined_call_operand.vmem [shape: bf16[256,32], index: 0, kind: input, shape index: {}]   ;;  %s2567_s1 = inlined_call_operand.hbm [shape: bf16[32,128], index: 1, kind: input, shape index: {}]   ;;  %s2568_s2 = inlined_call_operand.vmem [shape: f32[1,128], index: 2, kind: input, shape index: {}]   ;;  %s2569_s3 = inlined_call_operand.vmem [shape: bf16[128,128], index: 3, kind: input, shape index: {}]   ;;  %s2570_s4 = inlined_call_operand.vmem [shape: f32[1,128], index: 4, kind: input, shape index: {}]   ;;  %s2571_s5 = inlined_call_operand.vmem [shape: bf16[128,128], index: 5, kind: input, shape index: {}]   ;;  %s2572_s6 = inlined_call_operand.hbm [shape: f32[1,128], index: 6, kind: input, shape index: {}]   ;;  %s2573_s7 = inlined_call_operand.hbm [shape: bf16[128,128], index: 7, kind: input, shape index: {}]   ;;  %s2574_s8 = inlined_call_operand.hbm [shape: f32[1,128], index: 8, kind: input, shape index: {}]   ;;  %s2575_s9 = inlined_call_operand.vmem [shape: bf16[128,128], index: 9, kind: input, shape index: {}]   ;;  %s2576_s10 = inlined_call_operand.vmem [shape: f32[1,128], index: 10, kind: input, shape index: {}]   ;;  %s2577_s11 = inlined_call_operand.hbm [shape: f32[256,128], index: 11, kind: output, shape index: {}]  }
   0x1   :  { %2586 = sst [smem:[#allocation20_spill]] %s2567_s1 }
   0x2   :  { %2587 = sst [smem:[#allocation21_spill]] %s2572_s6 }
   0x3   :  { %16 = vsyncpa [#allocation3], 0 }
   0x4   :  { %17 = vsyncpa [#allocation6], 0 }
   0x5   :  { %18 = vsyncpa [#allocation9], 0 }
   0x6   :  { %19 = vsyncpa [#allocation4], 0 }
   0x7   :  { %21 = vsyncpa [#allocation4 + $0x1], 0  ;;  %s2227_s17 = smov 0   ;;  %s2229_s18 = smov 0  }
   0x8   :  { %s2231_s19 = smov 0   ;;  %s2233_s20 = smov 0  }
   0x9 LB: > { %2588 = sst [smem:[#allocation15_spill]] %s2144_s17  ;;  %s2248_s21 = sadd.s32 4294967295, %s2156_s20   ;;  %s2156_s20 = sphi %s2233_s20, %s2611_s20   ;;  %s2152_s19 = sphi %s2231_s19, %s2613_s19   ;;  %s2148_s18 = sphi %s2229_s18, %s2615_s18   ;;  %s2144_s17 = sphi %s2227_s17, %s2614_s17  }
   0xa   : > { %2589 = sst [smem:[#allocation16_spill]] %s2152_s19  ;;  %s1546_s22 = sadd.s32 4294967294, %s2156_s20  }
   0xb   : > { %s2252_s23 = sadd.s32 1, %s2156_s20   ;;  %s270_s24 = sadd.s32 1, %s2152_s19 }
   0xc   : > { %2590 = sst [smem:[#allocation17_spill]] %s2252_s23  ;;  %s267_s25 = ssub.s32 %s2156_s20, %s2252_s23 }
   0xd   : > { %p280_p0 = scmp.ne.s32.totalorder %s2152_s19, %s2148_s18  ;;  %p268_p1 = scmp.eq.s32.totalorder %s267_s25, 0 }
   0xe   : > { %p281_p2 = scmp.eq.s32.totalorder %s2248_s21, 1  ;;  %p286_p3 = scmp.ne.s32.totalorder %s2148_s18, %s2144_s17 }
   0xf   : > { %p287_p4 = scmp.eq.s32.totalorder %s1546_s22, 1  ;;  %p1547_p7 = scmp.ge.s32.totalorder %s2156_s20, 1 }
  0x10   : > { %s2263_s26 = scalar_select %p268_p1, %s2152_s19, %s270_s24  }
  0x11   : > { %p2265_p5 = por %p281_p2, %p280_p0  ;;  %p2269_p6 = por %p287_p4, %p286_p3 }
  0x12   : > { %2591 = sst [smem:[#allocation18_spill]] %s2263_s26  ;;  %p294_p8 = scmp.lt.s32.totalorder %s2156_s20, 3 }
  0x13   : > { %s2592_s27 = scalar_select %p2265_p5, 1, 0 }
  0x14   : > { %s2593_s28 = scalar_select %p2269_p6, 1, 0 }
  0x15   : > { %p2581_p9 = scmp.eq.s32.totalorder %s2248_s21, 0  ;;  %p2276_p10 = pnand %p1547_p7, %p294_p8 }
  0x16   : > { %2594 = sst [smem:[#allocation19_spill]] %s2593_s28  ;;  %s2158_s30 = smov [#allocation5]  }
  0x17   : > { %s2595_s29 = scalar_select %p2276_p10, 1, 0 }
  0x18   : > { %s332_s12 = sshll.u32 %s2158_s30, 4  ;;  %p1862_p11 = pneg %p2276_p10  ;;  %s333_s12 = int_to_ptr.vmem [resolvable:$true] %s332_s12 }
  0x19   : > { %s2159_s13 = smov [#allocation2]   ;;  %s2160_s16 = smov [#allocation7]  }
  0x1a   : > { %s306_s14 = sshll.u32 %s2159_s13, 4  ;;  %p2284_p12 = pnand %p2581_p9, %p1862_p11  ;;  %s2288_s14 = int_to_ptr.vmem [resolvable:$true] %s306_s14 }
  0x1b   : > { %s2290_s22 = sshll.u32 %s2160_s16, 4  ;;  %s2597_s6 = sld [smem:[#allocation21_spill]]  ;;  %s343_s22 = int_to_ptr.vmem [resolvable:$true] %s2290_s22 }
  0x1c   : > { %p2300_p0 = pneg %p2284_p12 }
  0x21   : > { %s1970_s30 = scalar_lea.hbm %s2597_s6, 16 }
  0x22   : > { %p1971_p13 = scmp.ne.s32.totalorder %s2597_s6, %s1970_s30  ;;  %p1977_p3 = scmp.lt.u32.totalorder %s1970_s30, %s2597_s6 }
  0x24   : > { %p1973_p1 = pnand %p2300_p0, %p1971_p13 }
  0x26   : > { %p1974_p2 = pneg %p1973_p1 }
  0x28   : > { %p1979_p4 = pnand %p1977_p3, %p1974_p2 }
  0x2a   : > { %1982 = shalt.err (!%p1979_p4)
}
  0x2b   : > { %s1983_s24 = scalar_lea.vmem %s333_s12, 16  ;;  %s1990_s19 = scalar_lea.vmem %s333_s12, 32 }
  0x2c   : > { %p1984_p7 = scmp.ne.s32.totalorder %s333_s12, %s1983_s24  ;;  %p1991_p9 = scmp.lt.s32.totalorder %s333_s12, %s333_s12 }
  0x2d   : > { %p1992_p6 = scmp.lt.s32.totalorder %s1990_s19, %s1983_s24 }
  0x2e   : > { %p1986_p8 = pnand %p1984_p7, %p2300_p0 }
  0x2f   : > { %p1993_p5 = por %p1992_p6, %p1991_p9 }
  0x30   : > { %p1987_p11 = pneg %p1986_p8 }
  0x32   : > { %p1994_p10 = pnand %p1993_p5, %p1987_p11 }
  0x34   : > { %1997 = shalt.err (!%p1994_p10)
}
  0x35   : > { %1868 = dma.hbm_to_vmem [thread:$0]  (!%p2284_p12), %s2597_s6, 16, %s333_s12, [#allocation6]  }
  0x36   : > { %s2599_s1 = sld [smem:[#allocation20_spill]] }
  0x3c   : > { %s1998_s16 = scalar_lea.hbm %s2599_s1, 256 }
  0x3d   : > { %p1999_p13 = scmp.ne.s32.totalorder %s2599_s1, %s1998_s16  ;;  %p2005_p5 = scmp.lt.u32.totalorder %s1998_s16, %s2599_s1 }
  0x3f   : > { %p2001_p1 = pnand %p1999_p13, %p2300_p0 }
  0x41   : > { %p2002_p6 = pneg %p2001_p1 }
  0x43   : > { %p2007_p9 = pnand %p2005_p5, %p2002_p6 }
  0x45   : > { %2010 = shalt.err (!%p2007_p9)
}
  0x46   : > { %s2011_s12 = scalar_lea.vmem %s2288_s14, 256  ;;  %p2019_p4 = scmp.lt.s32.totalorder %s2288_s14, %s2288_s14 }
  0x47   : > { %p2012_p10 = scmp.ne.s32.totalorder %s2288_s14, %s2011_s12  ;;  %p2020_p7 = scmp.lt.s32.totalorder %s2011_s12, %s2011_s12 }
  0x49   : > { %p2014_p2 = pnand %p2012_p10, %p2300_p0  ;;  %p2021_p8 = por %p2020_p7, %p2019_p4 }
  0x4b   : > { %p2015_p3 = pneg %p2014_p2 }
  0x4d   : > { %p2022_p11 = pnand %p2021_p8, %p2015_p3 }
  0x4f   : > { %2025 = shalt.err (!%p2022_p11)
}
  0x50   : > { %s2161_s17 = smov 64   ;;  %s2162_s28 = smov 4  }
  0x51   : > { %1865 = dma.hbm_to_vmem [thread:$0]  (!%p2284_p12), %s2599_s1, 256, %s2288_s14, [#allocation3], %s2161_s17, %s2161_s17, %s2162_s28  }
  0x52   : > { %s2026_s16 = scalar_lea.hbm %s2573_s7, 1024 }
  0x53   : > { %p2027_p13 = scmp.ne.s32.totalorder %s2573_s7, %s2026_s16  ;;  %p2033_p5 = scmp.lt.u32.totalorder %s2026_s16, %s2573_s7 }
  0x55   : > { %p2029_p1 = pnand %p2027_p13, %p2300_p0 }
  0x57   : > { %p2030_p6 = pneg %p2029_p1 }
  0x59   : > { %p2035_p9 = pnand %p2033_p5, %p2030_p6 }
  0x5b   : > { %2038 = shalt.err (!%p2035_p9)
}
  0x5c   : > { %s2039_s26 = scalar_lea.vmem %s343_s22, 1024  ;;  %p2047_p4 = scmp.lt.s32.totalorder %s343_s22, %s343_s22 }
  0x5d   : > { %p2040_p10 = scmp.ne.s32.totalorder %s343_s22, %s2039_s26  ;;  %p2048_p7 = scmp.lt.s32.totalorder %s2039_s26, %s2039_s26 }
  0x5f   : > { %p2042_p2 = pnand %p2040_p10, %p2300_p0  ;;  %p2049_p8 = por %p2048_p7, %p2047_p4 }
  0x61   : > { %p2043_p3 = pneg %p2042_p2 }
  0x63   : > { %p2050_p11 = pnand %p2049_p8, %p2043_p3 }
  0x65   : > { %2053 = shalt.err (!%p2050_p11)
}
  0x66   : > { %1871 = dma.hbm_to_vmem [thread:$0]  (!%p2284_p12), %s2573_s7, 1024, %s343_s22, [#allocation6], %s2161_s17, %s2161_s17, %s2162_s28  }
  0x67   : > { %s2163_s6 = smov [#allocation8]   ;;  %s2054_s24 = scalar_lea.hbm %s2574_s8, 16 }
  0x68   : > { %s356_s23 = sshll.u32 %s2163_s6, 4  ;;  %p2055_p13 = scmp.ne.s32.totalorder %s2574_s8, %s2054_s24  ;;  %s357_s23 = int_to_ptr.vmem [resolvable:$true] %s356_s23 }
  0x69   : > { %p2061_p5 = scmp.lt.u32.totalorder %s2054_s24, %s2574_s8 }
  0x6a   : > { %p2057_p1 = pnand %p2055_p13, %p2300_p0 }
  0x6c   : > { %p2058_p6 = pneg %p2057_p1 }
  0x6e   : > { %p2063_p9 = pnand %p2061_p5, %p2058_p6 }
  0x70   : > { %2066 = shalt.err (!%p2063_p9)
}
  0x71   : > { %s2067_s22 = scalar_lea.vmem %s357_s23, 16  ;;  %s2074_s17 = scalar_lea.vmem %s357_s23, 32 }
  0x72   : > { %p2068_p10 = scmp.ne.s32.totalorder %s357_s23, %s2067_s22  ;;  %p2075_p4 = scmp.lt.s32.totalorder %s357_s23, %s357_s23 }
  0x73   : > { %p2076_p7 = scmp.lt.s32.totalorder %s2074_s17, %s2067_s22 }
  0x74   : > { %p2070_p2 = pnand %p2068_p10, %p2300_p0 }
  0x75   : > { %p2077_p8 = por %p2076_p7, %p2075_p4 }
  0x76   : > { %p2071_p3 = pneg %p2070_p2 }
  0x78   : > { %p2078_p11 = pnand %p2077_p8, %p2071_p3 }
  0x7a   : > { %2081 = shalt.err (!%p2078_p11)
}
  0x7b   : > { %1874 = dma.hbm_to_vmem [thread:$0]  (!%p2284_p12), %s2574_s8, 16, %s357_s23, [#allocation9]  }
  0x7c   : > { %p2600_p13 = scmp.ne.s32.totalorder %s2595_s29, 0 }
  0x7d   : > { %p2601_p1 = scmp.eq.s32.totalorder (!%p2600_p13), %s2248_s21, 0 }
  0x7e   : > { %384 = sbr.rel (%p2600_p13) target bundleno = 1294 (0x50e), region = 64 }
  0x85   : > { %2127 = dma.done.wait (%p2601_p1), [#allocation3], 256   ;;  %p2602_p0 = pmov %p2601_p1 }
  0x87   : > { %2129 = vsyncadd (%p2602_p0), [#allocation3], 4294967040  ;;  %p2603_p6 = pmov %p2602_p0 }
  0x88   : > { %p2604_p5 = pmov %p2602_p0 }
  0x89   : > { %2131 = dma.done.wait (%p2603_p6), [#allocation6], 1040  }
  0x8a   : > { %2133 = vsyncadd (%p2604_p5), [#allocation6], 4294966256  ;;  %p2605_p9 = pmov %p2602_p0 }
  0x8b   : > { %p2606_p12 = pmov %p2602_p0 }
  0x8c   : > { %2135 = dma.done.wait (%p2605_p9), [#allocation9], 16  }
  0x8d   : > { %2137 = vsyncadd (%p2606_p12), [#allocation9], 4294967280  ;;  %s1559_s1 = sshll.u32 %s2248_s21, 4  ;;  %v1928_v0 = vld [vmem:[#allocation2] sm:$0xff]   ;;  %v1929_v1 = vld [vmem:[#allocation2 + $0x8] sm:$0xff]   ;;  %vm523_vm0 = vcmask 261120  }
  0x8e   : > { %p437_p10 = scmp.lt.s32.totalorder %s1559_s1, 31  ;;  %1696 = vmatprep.subr.bf16.mxu0 %v1928_v0  ;;  %v1938_v5 = vld [vmem:[%s2569_s3] sm:$0xff]   ;;  %v1939_v6 = vld [vmem:[%s2569_s3 + $0x8] sm:$0xff]   ;;  %v1940_v8 = vld [vmem:[%s2569_s3 + $0x10] sm:$0xff]   ;;  %s1621_s12 = sshll.u32 %s2248_s21, 11 }
  0x8f   : > { %1697 = vmatpush3.bf16.msra.mxu0 %v1928_v0  ;;  %1716 = vmatprep.subr.bf16.mxu1 %v1938_v5  ;;  %v1941_v10 = vld [vmem:[%s2569_s3 + $0x18] sm:$0xff]   ;;  %v1942_v12 = vld [vmem:[%s2569_s3 + $0x20] sm:$0xff]   ;;  %v1943_v14 = vld [vmem:[%s2569_s3 + $0x28] sm:$0xff]   ;;  %s2516_s28 = scalar_lea.hbm %s2577_s11, %s1621_s12  ;;  %p2607_p3 = scmp.ne.s32.totalorder %s2592_s27, 0 }
  0x90   : > { %s2617_s1 = smov (!%p437_p10, %s1559_s1), 31  ;;  %1698 = vmatprep.subr.bf16.mxu0 %v1929_v1  ;;  %1717 = vmatpush3.bf16.msra.mxu1 %v1938_v5  ;;  %v1944_v16 = vld [vmem:[%s2569_s3 + $0x30] sm:$0xff]   ;;  %v1945_v17 = vld [vmem:[%s2569_s3 + $0x38] sm:$0xff]   ;;  %v1946_v18 = vld [vmem:[%s2571_s5] sm:$0xff]  }
  0x91   : > { %s1560_s29 = sshll.u32 %s2617_s1, 2  ;;  %1718 = vmatprep.subr.bf16.mxu1 %v1939_v6  ;;  %v1947_v19 = vld [vmem:[%s2571_s5 + $0x8] sm:$0xff]   ;;  %v1948_v20 = vld [vmem:[%s2571_s5 + $0x10] sm:$0xff]   ;;  %v1949_v21 = vld [vmem:[%s2571_s5 + $0x18] sm:$0xff]   ;;  %s2164_s1 = smov [#allocation10]  }
  0x92   : > { %s2394_s25 = scalar_lea.vmem %s2566_s0, %s1560_s29  ;;  %v1950_v22 = vld [vmem:[%s2571_s5 + $0x20] sm:$0xff]   ;;  %v1951_v23 = vld [vmem:[%s2571_s5 + $0x28] sm:$0xff]   ;;  %s2086_s29 = sshll.u32 %s2164_s1, 4  ;;  %s2087_s29 = int_to_ptr.vmem [resolvable:$false] %s2086_s29 }
  0x93   : > { %v1930_v2 = vld [vmem:[%s2394_s25] sm:$0xff]   ;;  %v1931_v3 = vld [vmem:[%s2394_s25 + $0x8] sm:$0xff]   ;;  %1699 = vmatpush3.bf16.msra.mxu0 %v1929_v1  ;;  %v1932_v4 = vld [vmem:[%s2394_s25 + $0x10] sm:$0xff]   ;;  %s2088_s15 = scalar_lea.vmem %s2087_s29, 4096 }
  0x94   : > { %1700 = vmatprep.mubr.msk.bf16.mxu0 %vm523_vm0, %v1930_v2  ;;  %v1933_v7 = vld [vmem:[%s2394_s25 + $0x18] sm:$0xff]   ;;  %v1934_v9 = vld [vmem:[%s2394_s25 + $0x20] sm:$0xff]   ;;  %1719 = vmatpush3.bf16.msra.mxu1 %v1939_v6  ;;  %v1935_v11 = vld [vmem:[%s2394_s25 + $0x28] sm:$0xff]  }
  0x95   : > { %1720 = vmatprep.subr.bf16.mxu1 %v1940_v8  ;;  %v1936_v13 = vld [vmem:[%s2394_s25 + $0x30] sm:$0xff]   ;;  %v1937_v15 = vld [vmem:[%s2394_s25 + $0x38] sm:$0xff]   ;;  %1748 = vmatprep.subr.bf16.mxu0 %v1946_v18  ;;  %v1561_v24 = vld [vmem:[%s2568_s2] ss:$0 sm:$0xff]  ;;  %s433_s25 = sand.u32 1, %s2148_s18  }
  0x96   : > { %1701 = vmatmul.mubr.msk.bf16.vlgmr.msra.gmra.mrb[0].mxu0 %vm523_vm0, %v1931_v3  ;;  %s1558_s30 = sshll.u32 %s433_s25, 7  ;;  %s2525_s21 = scalar_lea.sflag [#allocation4], %s433_s25 }
  0x97   : > { %1704 = vmatprep.mubr.msk.bf16.mxu0 %vm523_vm0, %v1932_v4  ;;  %1749 = vmatpush3.bf16.msra.mxu0 %v1946_v18  ;;  %v1953_v18 = vld [vmem:[%s2571_s5 + $0x38] sm:$0xff]   ;;  %s2496_s19 = scalar_lea.vmem [#allocation10], %s1558_s30 }
  0x98   : > { %1721 = vmatpush3.bf16.msra.mxu1 %v1940_v8  ;;  %1750 = vmatprep.subr.bf16.mxu0 %v1947_v19  ;;  %s1443_s26 = sshll.u32 %s2496_s19, 4  ;;  %s2518_s26 = int_to_ptr.vmem [resolvable:$true] %s1443_s26 }
  0x99   : > { %1722 = vmatprep.subr.bf16.mxu1 %v1941_v10  ;;  %s2082_s14 = scalar_lea.vmem %s2518_s26, 2048  ;;  %p2089_p8 = scmp.lt.s32.totalorder %s2518_s26, %s2087_s29 }
  0x9a   : > { %p2083_p2 = scmp.ne.s32.totalorder %s2518_s26, %s2082_s14  ;;  %p2090_p11 = scmp.lt.s32.totalorder %s2088_s15, %s2082_s14 }
  0x9b   : > { %1751 = vmatpush3.bf16.msra.mxu0 %v1947_v19  ;;  %v1954_v19 = vld [vmem:[#allocation7] sm:$0xff]  }
  0x9c   : > { %1723 = vmatpush3.bf16.msra.mxu1 %v1941_v10  ;;  %1752 = vmatprep.subr.bf16.mxu0 %v1948_v20  ;;  %p2084_p4 = pnand %p2083_p2, %p2607_p3  ;;  %p2091_p13 = por %p2090_p11, %p2089_p8 }
  0x9d   : > { %1724 = vmatprep.subr.bf16.mxu1 %v1942_v12 }
  0x9e   : > { %1705 = vmatmul.mubr.msk.bf16.gmra.mrb[4].mxu0 %vm523_vm0, %v1933_v7  ;;  %p2085_p7 = pneg %p2084_p4 }
  0x9f   : > { %1708 = vmatprep.mubr.msk.bf16.mxu0 %vm523_vm0, %v1934_v9  ;;  %1753 = vmatpush3.bf16.msra.mxu0 %v1948_v20  ;;  %v1955_v20 = vld [vmem:[#allocation7 + $0x8] sm:$0xff]  }
  0xa0   : > { %1725 = vmatpush3.bf16.msra.mxu1 %v1942_v12  ;;  %1754 = vmatprep.subr.bf16.mxu0 %v1949_v21  ;;  %p2092_p1 = pnand %p2091_p13, %p2085_p7 }
  0xa1   : > { %1726 = vmatprep.subr.bf16.mxu1 %v1943_v14 }
  0xa3   : > { %1755 = vmatpush3.bf16.msra.mxu0 %v1949_v21  ;;  %v1956_v21 = vld [vmem:[#allocation7 + $0x10] sm:$0xff]  }
  0xa4   : > { %1727 = vmatpush3.bf16.msra.mxu1 %v1943_v14  ;;  %1756 = vmatprep.subr.bf16.mxu0 %v1950_v22 }
  0xa5   : > { %1728 = vmatprep.subr.bf16.mxu1 %v1944_v16 }
  0xa6   : > { %1709 = vmatmul.mubr.msk.bf16.gmra.mrb[8].mxu0 %vm523_vm0, %v1935_v11 }
  0xa7   : > { %1712 = vmatprep.mubr.msk.bf16.mxu0 %vm523_vm0, %v1936_v13  ;;  %1757 = vmatpush3.bf16.msra.mxu0 %v1950_v22  ;;  %v1957_v22 = vld [vmem:[#allocation7 + $0x18] sm:$0xff]  }
  0xa8   : > { %1729 = vmatpush3.bf16.msra.mxu1 %v1944_v16  ;;  %1758 = vmatprep.subr.bf16.mxu0 %v1951_v23 }
  0xa9   : > { %1730 = vmatprep.subr.bf16.mxu1 %v1945_v17 }
  0xab   : > { %1759 = vmatpush3.bf16.msra.mxu0 %v1951_v23  ;;  %v1958_v23 = vld [vmem:[#allocation7 + $0x20] sm:$0xff]  }
  0xac   : > { %1731 = vmatpush3.bf16.msra.mxu1 %v1945_v17  ;;  %v1952_v17 = vld [vmem:[%s2571_s5 + $0x30] sm:$0xff]  }
  0xad   : > { %1760 = vmatprep.subr.bf16.mxu0 %v1952_v17  ;;  %1780 = vmatprep.subr.bf16.mxu1 %v1954_v19 }
  0xae   : > { %1713 = vmatmul.mubr.msk.bf16.gmra.mrb[12].mxu0 %vm523_vm0, %v1937_v15 }
  0xaf   : > { %1761 = vmatpush3.bf16.msra.mxu0 %v1952_v17 }
  0xb0   : > { %1762 = vmatprep.subr.bf16.mxu0 %v1953_v18 }
  0xb3   : > { %1763 = vmatpush3.bf16.msra.mxu0 %v1953_v18  ;;  %v1960_v18 = vld [vmem:[#allocation7 + $0x30] sm:$0xff]  }
 0x169   : > { %v1702_v25 = vpop.f32.mrb[0].mxu0 }
 0x16a   : > { %v591_v26 = vadd.f32 %v1702_v25, %v1561_v24  ;;  %v582_v27 = vpop.f32.mrb[1].mxu0  ;;  %v1580_v25 = vld [vmem:[%s2570_s4] ss:$0 sm:$0xff] }
 0x16b   : > { %v583_v28 = vadd.f32 %v1561_v24, %v582_v27  ;;  %v1703_v29 = vpop.f32.mrb[2].mxu0 }
 0x16c   : > { %v594_v30 = vadd.f32 %v1703_v29, %v1561_v24  ;;  %v585_v31 = vpop.f32.mrb[3].mxu0  ;;  %v647_v33 = vmax.f32 %v591_v26, 0.0 }
 0x16d   : > { %v586_v32 = vadd.f32 %v1561_v24, %v585_v31  ;;  %v645_v35 = vmax.f32 %v583_v28, 0.0 }
 0x16e   : > { %v648_v34 = vmax.f32 %v594_v30, 0.0 }
 0x16f   : > { %v646_v36 = vmax.f32 %v586_v32, 0.0 }
 0x170   : > { %v662_v37 = vpack.c.bf16 %v648_v34, %v647_v33 }
 0x171   : > { %v1706_v38 = vpop.f32.mrb[4].mxu0  ;;  %v661_v39 = vpack.c.bf16 %v646_v36, %v645_v35 }
 0x172   : > { %v607_v40 = vadd.f32 %v1706_v38, %v1561_v24  ;;  %v598_v41 = vpop.f32.mrb[5].mxu0 }
 0x173   : > { %v599_v42 = vadd.f32 %v1561_v24, %v598_v41  ;;  %v1707_v43 = vpop.f32.mrb[6].mxu0  ;;  %1732 = vmatprep.mubr.bf16.mxu1 %v661_v39 }
 0x174   : > { %v610_v44 = vadd.f32 %v1707_v43, %v1561_v24  ;;  %v601_v45 = vpop.f32.mrb[7].mxu0  ;;  %1733 = vmatmul.mubr.bf16.vlgmr.msra.gmra.mrb[0].mxu1 %v662_v37  ;;  %v651_v47 = vmax.f32 %v607_v40, 0.0 }
 0x175   : > { %v602_v46 = vadd.f32 %v1561_v24, %v601_v45  ;;  %v649_v49 = vmax.f32 %v599_v42, 0.0  ;;  %1781 = vmatpush3.bf16.msra.mxu1 %v1954_v19  ;;  %v1961_v19 = vld [vmem:[#allocation7 + $0x38] sm:$0xff]  }
 0x176   : > { %v652_v48 = vmax.f32 %v610_v44, 0.0  ;;  %1782 = vmatprep.subr.bf16.mxu1 %v1955_v20 }
 0x177   : > { %v650_v50 = vmax.f32 %v602_v46, 0.0 }
 0x178   : > { %v664_v51 = vpack.c.bf16 %v652_v48, %v651_v47 }
 0x179   : > { %v663_v52 = vpack.c.bf16 %v650_v50, %v649_v49  ;;  %v1710_v53 = vpop.f32.mrb[8].mxu0  ;;  %1783 = vmatpush3.bf16.msra.mxu1 %v1955_v20  ;;  %v1962_v20 = vld [vmem:[%s2575_s9] sm:$0xff]  }
 0x17a   : > { %v623_v54 = vadd.f32 %v1710_v53, %v1561_v24  ;;  %v614_v55 = vpop.f32.mrb[9].mxu0  ;;  %1784 = vmatprep.subr.bf16.mxu1 %v1956_v21  ;;  %1812 = vmatprep.subr.bf16.mxu0 %v1962_v20 }
 0x17b   : > { %v615_v56 = vadd.f32 %v1561_v24, %v614_v55  ;;  %v1711_v57 = vpop.f32.mrb[10].mxu0  ;;  %1736 = vmatprep.mubr.bf16.mxu1 %v663_v52 }
 0x17c   : > { %v626_v58 = vadd.f32 %v1711_v57, %v1561_v24  ;;  %v617_v59 = vpop.f32.mrb[11].mxu0  ;;  %1737 = vmatmul.mubr.bf16.gmra.mrb[4].mxu1 %v664_v51  ;;  %v655_v61 = vmax.f32 %v623_v54, 0.0 }
 0x17d   : > { %v618_v60 = vadd.f32 %v1561_v24, %v617_v59  ;;  %v653_v63 = vmax.f32 %v615_v56, 0.0  ;;  %1785 = vmatpush3.bf16.msra.mxu1 %v1956_v21  ;;  %v1963_v21 = vld [vmem:[%s2575_s9 + $0x8] sm:$0xff]  }
 0x17e   : > { %v656_v62 = vmax.f32 %v626_v58, 0.0  ;;  %1786 = vmatprep.subr.bf16.mxu1 %v1957_v22 }
 0x17f   : > { %v654_v0 = vmax.f32 %v618_v60, 0.0 }
 0x180   : > { %v666_v1 = vpack.c.bf16 %v656_v62, %v655_v61 }
 0x181   : > { %v665_v2 = vpack.c.bf16 %v654_v0, %v653_v63  ;;  %v1714_v3 = vpop.f32.mrb[12].mxu0  ;;  %1787 = vmatpush3.bf16.msra.mxu1 %v1957_v22  ;;  %v1964_v22 = vld [vmem:[%s2575_s9 + $0x10] sm:$0xff]  }
 0x182   : > { %v639_v4 = vadd.f32 %v1714_v3, %v1561_v24  ;;  %v630_v5 = vpop.f32.mrb[13].mxu0  ;;  %1788 = vmatprep.subr.bf16.mxu1 %v1958_v23 }
 0x183   : > { %v631_v6 = vadd.f32 %v1561_v24, %v630_v5  ;;  %v1715_v7 = vpop.f32.mrb[14].mxu0  ;;  %1740 = vmatprep.mubr.bf16.mxu1 %v665_v2 }
 0x184   : > { %v642_v8 = vadd.f32 %v1715_v7, %v1561_v24  ;;  %v633_v9 = vpop.f32.mrb[15].mxu0  ;;  %1741 = vmatmul.mubr.bf16.gmra.mrb[8].mxu1 %v666_v1  ;;  %v659_v11 = vmax.f32 %v639_v4, 0.0 }
 0x185   : > { %v634_v10 = vadd.f32 %v1561_v24, %v633_v9  ;;  %v657_v13 = vmax.f32 %v631_v6, 0.0  ;;  %v1959_v24 = vld [vmem:[#allocation7 + $0x28] sm:$0xff]   ;;  %1789 = vmatpush3.bf16.msra.mxu1 %v1958_v23 }
 0x186   : > { %v660_v12 = vmax.f32 %v642_v8, 0.0  ;;  %1790 = vmatprep.subr.bf16.mxu1 %v1959_v24  ;;  %v1965_v23 = vld [vmem:[%s2575_s9 + $0x18] sm:$0xff]  }
 0x187   : > { %v658_v14 = vmax.f32 %v634_v10, 0.0 }
 0x188   : > { %v668_v15 = vpack.c.bf16 %v660_v12, %v659_v11 }
 0x189   : > { %v667_v16 = vpack.c.bf16 %v658_v14, %v657_v13  ;;  %1791 = vmatpush3.bf16.msra.mxu1 %v1959_v24  ;;  %v1966_v24 = vld [vmem:[%s2575_s9 + $0x20] sm:$0xff]  }
 0x18a   : > { %1792 = vmatprep.subr.bf16.mxu1 %v1960_v18 }
 0x18b   : > { %1744 = vmatprep.mubr.bf16.mxu1 %v667_v16 }
 0x18c   : > { %1745 = vmatmul.mubr.bf16.gmra.mrb[12].mxu1 %v668_v15 }
 0x18d   : > { %1793 = vmatpush3.bf16.msra.mxu1 %v1960_v18 }
 0x18e   : > { %1794 = vmatprep.subr.bf16.mxu1 %v1961_v19 }
 0x191   : > { %1795 = vmatpush3.bf16.msra.mxu1 %v1961_v19  ;;  %v1968_v19 = vld [vmem:[%s2575_s9 + $0x30] sm:$0xff]  }
 0x247   : > { %v1734_v26 = vpop.f32.mrb[0].mxu1 }
 0x248   : > { %v783_v27 = vadd.f32 %v1734_v26, %v1580_v25  ;;  %v774_v28 = vpop.f32.mrb[1].mxu1  ;;  %v1589_v26 = vld [vmem:[#allocation5] ss:$0 sm:$0xff] }
 0x249   : > { %v775_v29 = vadd.f32 %v1580_v25, %v774_v28  ;;  %v1735_v30 = vpop.f32.mrb[2].mxu1 }
 0x24a   : > { %v786_v31 = vadd.f32 %v1735_v30, %v1580_v25  ;;  %v777_v32 = vpop.f32.mrb[3].mxu1  ;;  %v839_v34 = vmax.f32 %v783_v27, 0.0 }
 0x24b   : > { %v778_v33 = vadd.f32 %v1580_v25, %v777_v32  ;;  %v837_v36 = vmax.f32 %v775_v29, 0.0 }
 0x24c   : > { %v840_v35 = vmax.f32 %v786_v31, 0.0 }
 0x24d   : > { %v838_v37 = vmax.f32 %v778_v33, 0.0 }
 0x24e   : > { %v854_v38 = vpack.c.bf16 %v840_v35, %v839_v34 }
 0x24f   : > { %v853_v39 = vpack.c.bf16 %v838_v37, %v837_v36  ;;  %v1738_v40 = vpop.f32.mrb[4].mxu1 }
 0x250   : > { %v799_v41 = vadd.f32 %v1738_v40, %v1580_v25  ;;  %v790_v42 = vpop.f32.mrb[5].mxu1 }
 0x251   : > { %v791_v43 = vadd.f32 %v1580_v25, %v790_v42  ;;  %v1739_v44 = vpop.f32.mrb[6].mxu1  ;;  %1764 = vmatprep.mubr.bf16.mxu0 %v853_v39 }
 0x252   : > { %v802_v45 = vadd.f32 %v1739_v44, %v1580_v25  ;;  %v793_v46 = vpop.f32.mrb[7].mxu1  ;;  %1765 = vmatmul.mubr.bf16.vlgmr.msra.gmra.mrb[16].mxu0 %v854_v38  ;;  %v843_v48 = vmax.f32 %v799_v41, 0.0 }
 0x253   : > { %v794_v47 = vadd.f32 %v1580_v25, %v793_v46  ;;  %v841_v50 = vmax.f32 %v791_v43, 0.0  ;;  %1813 = vmatpush3.bf16.msra.mxu0 %v1962_v20  ;;  %v1969_v20 = vld [vmem:[%s2575_s9 + $0x38] sm:$0xff]  }
 0x254   : > { %v844_v49 = vmax.f32 %v802_v45, 0.0  ;;  %1814 = vmatprep.subr.bf16.mxu0 %v1963_v21 }
 0x255   : > { %v842_v51 = vmax.f32 %v794_v47, 0.0 }
 0x256   : > { %v856_v52 = vpack.c.bf16 %v844_v49, %v843_v48 }
 0x257   : > { %v855_v53 = vpack.c.bf16 %v842_v51, %v841_v50  ;;  %v1742_v54 = vpop.f32.mrb[8].mxu1  ;;  %1815 = vmatpush3.bf16.msra.mxu0 %v1963_v21  ;;  %v1598_v21 = vld [vmem:[#allocation8] ss:$0 sm:$0xff] }
 0x258   : > { %v815_v55 = vadd.f32 %v1742_v54, %v1580_v25  ;;  %v806_v56 = vpop.f32.mrb[9].mxu1  ;;  %1816 = vmatprep.subr.bf16.mxu0 %v1964_v22 }
 0x259   : > { %v807_v57 = vadd.f32 %v1580_v25, %v806_v56  ;;  %v1743_v58 = vpop.f32.mrb[10].mxu1  ;;  %1768 = vmatprep.mubr.bf16.mxu0 %v855_v53 }
 0x25a   : > { %v818_v59 = vadd.f32 %v1743_v58, %v1580_v25  ;;  %v809_v60 = vpop.f32.mrb[11].mxu1  ;;  %1769 = vmatmul.mubr.bf16.gmra.mrb[20].mxu0 %v856_v52  ;;  %v847_v62 = vmax.f32 %v815_v55, 0.0 }
 0x25b   : > { %v810_v61 = vadd.f32 %v1580_v25, %v809_v60  ;;  %v845_v0 = vmax.f32 %v807_v57, 0.0  ;;  %1817 = vmatpush3.bf16.msra.mxu0 %v1964_v22 }
 0x25c   : > { %v848_v63 = vmax.f32 %v818_v59, 0.0  ;;  %1818 = vmatprep.subr.bf16.mxu0 %v1965_v23 }
 0x25d   : > { %v846_v1 = vmax.f32 %v810_v61, 0.0 }
 0x25e   : > { %v858_v2 = vpack.c.bf16 %v848_v63, %v847_v62 }
 0x25f   : > { %v857_v3 = vpack.c.bf16 %v846_v1, %v845_v0  ;;  %v1746_v4 = vpop.f32.mrb[12].mxu1  ;;  %1819 = vmatpush3.bf16.msra.mxu0 %v1965_v23 }
 0x260   : > { %v831_v5 = vadd.f32 %v1746_v4, %v1580_v25  ;;  %v822_v6 = vpop.f32.mrb[13].mxu1  ;;  %1820 = vmatprep.subr.bf16.mxu0 %v1966_v24 }
 0x261   : > { %v823_v7 = vadd.f32 %v1580_v25, %v822_v6  ;;  %v1747_v8 = vpop.f32.mrb[14].mxu1  ;;  %1772 = vmatprep.mubr.bf16.mxu0 %v857_v3 }
 0x262   : > { %v834_v9 = vadd.f32 %v1747_v8, %v1580_v25  ;;  %v825_v10 = vpop.f32.mrb[15].mxu1  ;;  %1773 = vmatmul.mubr.bf16.gmra.mrb[24].mxu0 %v858_v2  ;;  %v851_v12 = vmax.f32 %v831_v5, 0.0 }
 0x263   : > { %v826_v11 = vadd.f32 %v1580_v25, %v825_v10  ;;  %v849_v14 = vmax.f32 %v823_v7, 0.0  ;;  %v1967_v25 = vld [vmem:[%s2575_s9 + $0x28] sm:$0xff]   ;;  %1821 = vmatpush3.bf16.msra.mxu0 %v1966_v24 }
 0x264   : > { %v852_v13 = vmax.f32 %v834_v9, 0.0  ;;  %1822 = vmatprep.subr.bf16.mxu0 %v1967_v25 }
 0x265   : > { %v850_v15 = vmax.f32 %v826_v11, 0.0 }
 0x266   : > { %v860_v16 = vpack.c.bf16 %v852_v13, %v851_v12 }
 0x267   : > { %v859_v17 = vpack.c.bf16 %v850_v15, %v849_v14  ;;  %1823 = vmatpush3.bf16.msra.mxu0 %v1967_v25 }
 0x268   : > { %1824 = vmatprep.subr.bf16.mxu0 %v1968_v19 }
 0x269   : > { %1776 = vmatprep.mubr.bf16.mxu0 %v859_v17 }
 0x26a   : > { %1777 = vmatmul.mubr.bf16.gmra.mrb[28].mxu0 %v860_v16 }
 0x26b   : > { %1825 = vmatpush3.bf16.msra.mxu0 %v1968_v19 }
 0x26c   : > { %1826 = vmatprep.subr.bf16.mxu0 %v1969_v20 }
 0x26f   : > { %1827 = vmatpush3.bf16.msra.mxu0 %v1969_v20 }
 0x325   : > { %v1766_v27 = vpop.f32.mrb[16].mxu0 }
 0x326   : > { %v975_v28 = vadd.f32 %v1766_v27, %v1589_v26  ;;  %v966_v29 = vpop.f32.mrb[17].mxu0 }
 0x327   : > { %v967_v30 = vadd.f32 %v1589_v26, %v966_v29  ;;  %v1767_v31 = vpop.f32.mrb[18].mxu0 }
 0x328   : > { %v978_v32 = vadd.f32 %v1767_v31, %v1589_v26  ;;  %v969_v33 = vpop.f32.mrb[19].mxu0  ;;  %v1031_v35 = vmax.f32 %v975_v28, 0.0 }
 0x329   : > { %v970_v34 = vadd.f32 %v1589_v26, %v969_v33  ;;  %v1029_v37 = vmax.f32 %v967_v30, 0.0 }
 0x32a   : > { %v1032_v36 = vmax.f32 %v978_v32, 0.0 }
 0x32b   : > { %v1030_v38 = vmax.f32 %v970_v34, 0.0 }
 0x32c   : > { %v1046_v39 = vpack.c.bf16 %v1032_v36, %v1031_v35 }
 0x32d   : > { %v1045_v40 = vpack.c.bf16 %v1030_v38, %v1029_v37  ;;  %v1770_v41 = vpop.f32.mrb[20].mxu0 }
 0x32e   : > { %v991_v42 = vadd.f32 %v1770_v41, %v1589_v26  ;;  %v982_v43 = vpop.f32.mrb[21].mxu0 }
 0x32f   : > { %v983_v44 = vadd.f32 %v1589_v26, %v982_v43  ;;  %v1771_v45 = vpop.f32.mrb[22].mxu0  ;;  %1796 = vmatprep.mubr.bf16.mxu1 %v1045_v40 }
 0x330   : > { %v994_v46 = vadd.f32 %v1771_v45, %v1589_v26  ;;  %v985_v47 = vpop.f32.mrb[23].mxu0  ;;  %1797 = vmatmul.mubr.bf16.vlgmr.msra.gmra.mrb[16].mxu1 %v1046_v39  ;;  %v1035_v49 = vmax.f32 %v991_v42, 0.0 }
 0x331   : > { %v986_v48 = vadd.f32 %v1589_v26, %v985_v47  ;;  %v1033_v51 = vmax.f32 %v983_v44, 0.0 }
 0x332   : > { %v1036_v50 = vmax.f32 %v994_v46, 0.0 }
 0x333   : > { %v1034_v52 = vmax.f32 %v986_v48, 0.0 }
 0x334   : > { %v1048_v53 = vpack.c.bf16 %v1036_v50, %v1035_v49 }
 0x335   : > { %v1047_v54 = vpack.c.bf16 %v1034_v52, %v1033_v51  ;;  %v1774_v55 = vpop.f32.mrb[24].mxu0 }
 0x336   : > { %v1007_v56 = vadd.f32 %v1774_v55, %v1589_v26  ;;  %v998_v57 = vpop.f32.mrb[25].mxu0 }
 0x337   : > { %v999_v58 = vadd.f32 %v1589_v26, %v998_v57  ;;  %v1775_v59 = vpop.f32.mrb[26].mxu0  ;;  %1800 = vmatprep.mubr.bf16.mxu1 %v1047_v54 }
 0x338   : > { %v1010_v60 = vadd.f32 %v1775_v59, %v1589_v26  ;;  %v1001_v61 = vpop.f32.mrb[27].mxu0  ;;  %1801 = vmatmul.mubr.bf16.gmra.mrb[20].mxu1 %v1048_v53  ;;  %v1039_v63 = vmax.f32 %v1007_v56, 0.0 }
 0x339   : > { %v1002_v62 = vadd.f32 %v1589_v26, %v1001_v61  ;;  %v1037_v1 = vmax.f32 %v999_v58, 0.0 }
 0x33a   : > { %v1040_v0 = vmax.f32 %v1010_v60, 0.0 }
 0x33b   : > { %v1038_v2 = vmax.f32 %v1002_v62, 0.0 }
 0x33c   : > { %v1050_v3 = vpack.c.bf16 %v1040_v0, %v1039_v63 }
 0x33d   : > { %v1049_v4 = vpack.c.bf16 %v1038_v2, %v1037_v1  ;;  %v1778_v5 = vpop.f32.mrb[28].mxu0 }
 0x33e   : > { %v1023_v6 = vadd.f32 %v1778_v5, %v1589_v26  ;;  %v1014_v7 = vpop.f32.mrb[29].mxu0 }
 0x33f   : > { %v1015_v8 = vadd.f32 %v1589_v26, %v1014_v7  ;;  %v1779_v9 = vpop.f32.mrb[30].mxu0  ;;  %1804 = vmatprep.mubr.bf16.mxu1 %v1049_v4 }
 0x340   : > { %v1026_v10 = vadd.f32 %v1779_v9, %v1589_v26  ;;  %v1017_v11 = vpop.f32.mrb[31].mxu0  ;;  %1805 = vmatmul.mubr.bf16.gmra.mrb[24].mxu1 %v1050_v3  ;;  %v1043_v13 = vmax.f32 %v1023_v6, 0.0 }
 0x341   : > { %v1018_v12 = vadd.f32 %v1589_v26, %v1017_v11  ;;  %v1041_v15 = vmax.f32 %v1015_v8, 0.0 }
 0x342   : > { %v1044_v14 = vmax.f32 %v1026_v10, 0.0 }
 0x343   : > { %v1042_v16 = vmax.f32 %v1018_v12, 0.0 }
 0x344   : > { %v1052_v17 = vpack.c.bf16 %v1044_v14, %v1043_v13  ;;  %v1607_v14 = vld [vmem:[%s2576_s10] ss:$0 sm:$0xff] }
 0x345   : > { %v1051_v18 = vpack.c.bf16 %v1042_v16, %v1041_v15 }
 0x347   : > { %1808 = vmatprep.mubr.bf16.mxu1 %v1051_v18 }
 0x348   : > { %1809 = vmatmul.mubr.bf16.gmra.mrb[28].mxu1 %v1052_v17 }
 0x403   : > { %v1798_v22 = vpop.f32.mrb[16].mxu1 }
 0x404   : > { %v1167_v23 = vadd.f32 %v1798_v22, %v1598_v21  ;;  %v1158_v24 = vpop.f32.mrb[17].mxu1 }
 0x405   : > { %v1159_v25 = vadd.f32 %v1598_v21, %v1158_v24  ;;  %v1799_v26 = vpop.f32.mrb[18].mxu1 }
 0x406   : > { %v1170_v27 = vadd.f32 %v1799_v26, %v1598_v21  ;;  %v1161_v28 = vpop.f32.mrb[19].mxu1  ;;  %v1223_v30 = vmax.f32 %v1167_v23, 0.0 }
 0x407   : > { %v1162_v29 = vadd.f32 %v1598_v21, %v1161_v28  ;;  %v1221_v32 = vmax.f32 %v1159_v25, 0.0 }
 0x408   : > { %v1224_v31 = vmax.f32 %v1170_v27, 0.0 }
 0x409   : > { %v1222_v33 = vmax.f32 %v1162_v29, 0.0 }
 0x40a   : > { %v1238_v34 = vpack.c.bf16 %v1224_v31, %v1223_v30 }
 0x40b   : > { %v1237_v35 = vpack.c.bf16 %v1222_v33, %v1221_v32  ;;  %v1802_v36 = vpop.f32.mrb[20].mxu1 }
 0x40c   : > { %v1183_v37 = vadd.f32 %v1802_v36, %v1598_v21  ;;  %v1174_v38 = vpop.f32.mrb[21].mxu1 }
 0x40d   : > { %v1175_v39 = vadd.f32 %v1598_v21, %v1174_v38  ;;  %v1803_v40 = vpop.f32.mrb[22].mxu1  ;;  %1828 = vmatprep.mubr.bf16.mxu0 %v1237_v35 }
 0x40e   : > { %v1186_v41 = vadd.f32 %v1803_v40, %v1598_v21  ;;  %v1177_v42 = vpop.f32.mrb[23].mxu1  ;;  %1829 = vmatmul.mubr.bf16.vlgmr.msra.gmra.mrb[32].mxu0 %v1238_v34  ;;  %v1227_v44 = vmax.f32 %v1183_v37, 0.0 }
 0x40f   : > { %v1178_v43 = vadd.f32 %v1598_v21, %v1177_v42  ;;  %v1225_v46 = vmax.f32 %v1175_v39, 0.0 }
 0x410   : > { %v1228_v45 = vmax.f32 %v1186_v41, 0.0 }
 0x411   : > { %v1226_v47 = vmax.f32 %v1178_v43, 0.0 }
 0x412   : > { %v1240_v48 = vpack.c.bf16 %v1228_v45, %v1227_v44 }
 0x413   : > { %v1239_v49 = vpack.c.bf16 %v1226_v47, %v1225_v46  ;;  %v1806_v50 = vpop.f32.mrb[24].mxu1 }
 0x414   : > { %v1199_v51 = vadd.f32 %v1806_v50, %v1598_v21  ;;  %v1190_v52 = vpop.f32.mrb[25].mxu1 }
 0x415   : > { %v1191_v53 = vadd.f32 %v1598_v21, %v1190_v52  ;;  %v1807_v54 = vpop.f32.mrb[26].mxu1  ;;  %1832 = vmatprep.mubr.bf16.mxu0 %v1239_v49 }
 0x416   : > { %v1202_v55 = vadd.f32 %v1807_v54, %v1598_v21  ;;  %v1193_v56 = vpop.f32.mrb[27].mxu1  ;;  %1833 = vmatmul.mubr.bf16.gmra.mrb[36].mxu0 %v1240_v48  ;;  %v1231_v58 = vmax.f32 %v1199_v51, 0.0 }
 0x417   : > { %v1194_v57 = vadd.f32 %v1598_v21, %v1193_v56  ;;  %v1229_v60 = vmax.f32 %v1191_v53, 0.0 }
 0x418   : > { %v1232_v59 = vmax.f32 %v1202_v55, 0.0 }
 0x419   : > { %v1230_v61 = vmax.f32 %v1194_v57, 0.0 }
 0x41a   : > { %v1242_v62 = vpack.c.bf16 %v1232_v59, %v1231_v58 }
 0x41b   : > { %v1241_v63 = vpack.c.bf16 %v1230_v61, %v1229_v60  ;;  %v1810_v0 = vpop.f32.mrb[28].mxu1 }
 0x41c   : > { %v1215_v1 = vadd.f32 %v1810_v0, %v1598_v21  ;;  %v1206_v2 = vpop.f32.mrb[29].mxu1 }
 0x41d   : > { %v1207_v3 = vadd.f32 %v1598_v21, %v1206_v2  ;;  %v1811_v4 = vpop.f32.mrb[30].mxu1  ;;  %1836 = vmatprep.mubr.bf16.mxu0 %v1241_v63 }
 0x41e   : > { %v1218_v5 = vadd.f32 %v1811_v4, %v1598_v21  ;;  %v1209_v6 = vpop.f32.mrb[31].mxu1  ;;  %1837 = vmatmul.mubr.bf16.gmra.mrb[40].mxu0 %v1242_v62  ;;  %v1235_v8 = vmax.f32 %v1215_v1, 0.0 }
 0x41f   : > { %v1210_v7 = vadd.f32 %v1598_v21, %v1209_v6  ;;  %v1233_v10 = vmax.f32 %v1207_v3, 0.0 }
 0x420   : > { %v1236_v9 = vmax.f32 %v1218_v5, 0.0 }
 0x421   : > { %v1234_v11 = vmax.f32 %v1210_v7, 0.0 }
 0x422   : > { %v1244_v12 = vpack.c.bf16 %v1236_v9, %v1235_v8 }
 0x423   : > { %v1243_v13 = vpack.c.bf16 %v1234_v11, %v1233_v10 }
 0x425   : > { %1840 = vmatprep.mubr.bf16.mxu0 %v1243_v13 }
 0x426   : > { %1841 = vmatmul.mubr.bf16.gmra.mrb[44].mxu0 %v1244_v12 }
 0x4e1   : > { %v1830_v15 = vpop.f32.mrb[32].mxu0 }
 0x4e2   : > { %v1359_v16 = vadd.f32 %v1830_v15, %v1607_v14  ;;  %v1350_v17 = vpop.f32.mrb[33].mxu0 }
 0x4e3   : > { %v1351_v18 = vadd.f32 %v1607_v14, %v1350_v17  ;;  %v1831_v19 = vpop.f32.mrb[34].mxu0 }
 0x4e4   : > { %1415 = vst [vmem:[%s2496_s19 + $0x10] sm:$0xff] %v1359_v16  ;;  %v1362_v20 = vadd.f32 %v1831_v19, %v1607_v14  ;;  %v1353_v21 = vpop.f32.mrb[35].mxu0 }
 0x4e5   : > { %1413 = vst [vmem:[%s2496_s19] sm:$0xff] %v1351_v18  ;;  %v1354_v22 = vadd.f32 %v1607_v14, %v1353_v21 }
 0x4e6   : > { %1416 = vst [vmem:[%s2496_s19 + $0x18] sm:$0xff] %v1362_v20 }
 0x4e7   : > { %1414 = vst [vmem:[%s2496_s19 + $0x8] sm:$0xff] %v1354_v22 }
 0x4e9   : > { %v1834_v23 = vpop.f32.mrb[36].mxu0 }
 0x4ea   : > { %v1375_v24 = vadd.f32 %v1834_v23, %v1607_v14  ;;  %v1366_v25 = vpop.f32.mrb[37].mxu0 }
 0x4eb   : > { %v1367_v26 = vadd.f32 %v1607_v14, %v1366_v25  ;;  %v1835_v27 = vpop.f32.mrb[38].mxu0 }
 0x4ec   : > { %1419 = vst [vmem:[%s2496_s19 + $0x30] sm:$0xff] %v1375_v24  ;;  %v1378_v28 = vadd.f32 %v1835_v27, %v1607_v14  ;;  %v1369_v29 = vpop.f32.mrb[39].mxu0 }
 0x4ed   : > { %1417 = vst [vmem:[%s2496_s19 + $0x20] sm:$0xff] %v1367_v26  ;;  %v1370_v30 = vadd.f32 %v1607_v14, %v1369_v29 }
 0x4ee   : > { %1420 = vst [vmem:[%s2496_s19 + $0x38] sm:$0xff] %v1378_v28 }
 0x4ef   : > { %1418 = vst [vmem:[%s2496_s19 + $0x28] sm:$0xff] %v1370_v30 }
 0x4f1   : > { %v1838_v31 = vpop.f32.mrb[40].mxu0 }
 0x4f2   : > { %v1391_v32 = vadd.f32 %v1838_v31, %v1607_v14  ;;  %v1382_v33 = vpop.f32.mrb[41].mxu0 }
 0x4f3   : > { %v1383_v34 = vadd.f32 %v1607_v14, %v1382_v33  ;;  %v1839_v35 = vpop.f32.mrb[42].mxu0 }
 0x4f4   : > { %1423 = vst [vmem:[%s2496_s19 + $0x50] sm:$0xff] %v1391_v32  ;;  %v1394_v36 = vadd.f32 %v1839_v35, %v1607_v14  ;;  %v1385_v37 = vpop.f32.mrb[43].mxu0 }
 0x4f5   : > { %1421 = vst [vmem:[%s2496_s19 + $0x40] sm:$0xff] %v1383_v34  ;;  %v1386_v38 = vadd.f32 %v1607_v14, %v1385_v37 }
 0x4f6   : > { %1424 = vst [vmem:[%s2496_s19 + $0x58] sm:$0xff] %v1394_v36 }
 0x4f7   : > { %1422 = vst [vmem:[%s2496_s19 + $0x48] sm:$0xff] %v1386_v38 }
 0x4f9   : > { %v1842_v39 = vpop.f32.mrb[44].mxu0 }
 0x4fa   : > { %v1407_v40 = vadd.f32 %v1842_v39, %v1607_v14  ;;  %v1398_v41 = vpop.f32.mrb[45].mxu0 }
 0x4fb   : > { %v1399_v42 = vadd.f32 %v1607_v14, %v1398_v41  ;;  %v1843_v43 = vpop.f32.mrb[46].mxu0 }
 0x4fc   : > { %1427 = vst [vmem:[%s2496_s19 + $0x70] sm:$0xff] %v1407_v40  ;;  %v1410_v44 = vadd.f32 %v1843_v43, %v1607_v14  ;;  %v1401_v45 = vpop.f32.mrb[47].mxu0 }
 0x4fd   : > { %1425 = vst [vmem:[%s2496_s19 + $0x60] sm:$0xff] %v1399_v42  ;;  %v1402_v46 = vadd.f32 %v1607_v14, %v1401_v45 }
 0x4fe   : > { %1428 = vst [vmem:[%s2496_s19 + $0x78] sm:$0xff] %v1410_v44 }
 0x4ff   : > { %1426 = vst [vmem:[%s2496_s19 + $0x68] sm:$0xff] %v1402_v46 }
 0x500   : > { %2095 = shalt.err (!%p2092_p1)
}
 0x501   : > { %s2096_s13 = scalar_lea.hbm %s2516_s28, 2048  ;;  %s2100_s25 = scalar_lea.hbm %s2577_s11, 4096 }
 0x502   : > { %p2097_p0 = scmp.ne.s32.totalorder %s2516_s28, %s2096_s13  ;;  %p2101_p9 = scmp.lt.u32.totalorder %s2516_s28, %s2577_s11 }
 0x503   : > { %p2102_p12 = scmp.lt.u32.totalorder %s2100_s25, %s2096_s13  ;;  %p2104_p2 = scmp.lt.u32.totalorder %s2096_s13, %s2516_s28 }
 0x504   : > { %p2098_p6 = pnand %p2097_p0, %p2607_p3 }
 0x505   : > { %p2103_p10 = por %p2102_p12, %p2101_p9 }
 0x506   : > { %p2099_p5 = pneg %p2098_p6 }
 0x507   : > { %p2105_p4 = por %p2104_p2, %p2103_p10 }
 0x509   : > { %p2106_p7 = pnand %p2105_p4, %p2099_p5 }
 0x50b   : > { %2109 = shalt.err (!%p2106_p7)
}
 0x50c   : > { %s2165_s24 = smov 128   ;;  %s2166_s19 = smov 8  }
 0x50d   : > { %1860 = dma.vmem_to_hbm [thread:$0]  (%p2607_p3), %s2518_s26, 2048, %s2516_s28, %s2525_s21, %s2165_s24, %s2165_s24, %s2166_s19  }
 0x50e PF: > { %s2608_s12 = sld [smem:[#allocation15_spill]]  ;;  %s2609_s22 = sld [smem:[#allocation19_spill]] }
 0x50f   : > { %p1887_p8 = scmp.ge.s32.totalorder %s2156_s20, 2 }
 0x514   : > { %s1458_s17 = sand.u32 1, %s2608_s12   ;;  %p2610_p11 = scmp.ne.s32.totalorder %s2609_s22, 0 }
 0x515   : > { %s1459_s14 = scalar_lea.sflag [#allocation4], %s1458_s17 }
 0x516   : > { %p1876_p13 = pnand %p1887_p8, %p2610_p11 }
 0x518   : > { %2139 = dma.done.wait (!%p1876_p13), %s1459_s14, 2048  }
 0x519   : > { %2141 = vsyncadd (!%p1876_p13), %s1459_s14, 4294965248  ;;  %s2611_s20 = sld [smem:[#allocation17_spill]]  ;;  %s2612_s1 = sld [smem:[#allocation16_spill]] }
 0x51a   : > { %s2613_s19 = sld [smem:[#allocation18_spill]]  ;;  %s2614_s17 = smov %s2148_s18 }
 0x51f   : > { %p24_p1 = scmp.ge.s32.totalorder %s2611_s20, 4   ;;  %s2615_s18 = smov %s2612_s1 }
 0x521   :  { %26 = sbr.rel (!%p24_p1) target bundleno = 9 (0x9), region = 116 }
 0x528   :  { %1464 = vsyncpa [#allocation3], 1 }
 0x529   :  { %1466 = vsyncpa [#allocation3 + $0x1], 1 }
 0x52a   :  { %1467 = vsyncpa [#allocation6], 1 }
 0x52b   :  { %1468 = vsyncpa [#allocation9], 1 }
 0x52c   :  { %1469 = vsyncpa [#allocation4], 1 }
 0x52d   :  { %1471 = vsyncpa [#allocation4 + $0x1], 1 }

</bundles_post_ra>
